<compile_context>
chip_gen: v5e
topology: v5e:2x2
jax: 0.10.0
libtpu: 0.0.40
codegen_flags: <defaults>
</compile_context>

<pallas_src>
import jax
import jax.numpy as jnp
from jax.experimental import pallas as pl
from jax.experimental.pallas import tpu as pltpu

F_X = 32
F_E = 32
HIDDEN = 64
OUT_DIM = 64
IN_DIM = 2 * F_X + F_E
DEFAULT_TILE_E = 4096  # ~4 MiB of VMEM at bf16 inputs / f32 output, double-buffered


def _round_up(x, m):
    return ((x + m - 1) // m) * m


def edge_mlp_kernel(src_ref, dest_ref, eattr_ref,
                    w1a_ref, w1b_ref, w1c_ref, b1_ref,
                    w2_ref, b2_ref, out_ref):
    # Layer 1 as split-K matmuls (replaces concat along the lane dim).
    h = jnp.dot(src_ref[...], w1a_ref[...], preferred_element_type=jnp.float32)
    h += jnp.dot(dest_ref[...], w1b_ref[...], preferred_element_type=jnp.float32)
    h += jnp.dot(eattr_ref[...], w1c_ref[...], preferred_element_type=jnp.float32)
    h = jnp.maximum(h + b1_ref[...], 0.0)

    # Layer 2 (bf16 operands, f32 accumulation).
    y = jnp.dot(h.astype(w2_ref.dtype), w2_ref[...],
                preferred_element_type=jnp.float32)
    out_ref[...] = (y + b2_ref[...]).astype(out_ref.dtype)


def edge_model_forward(src, dest, edge_attr, u, batch, params,
                       *, tile_e=DEFAULT_TILE_E, compute_dtype=jnp.bfloat16):
    """Pallas-backed EdgeModel.forward. `u` and `batch` are unused (as in torch)."""
    del u, batch
    w1, b1, w2, b2 = params
    E = src.shape[0]

    # bf16 for everything that traverses HBM per-edge or per-weight; biases
    # stay f32 (tiny, added to the f32 accumulator).
    src_c = src.astype(compute_dtype)
    dest_c = dest.astype(compute_dtype)
    eattr_c = edge_attr.astype(compute_dtype)
    w1a = w1[:F_X].astype(compute_dtype)
    w1b = w1[F_X:2 * F_X].astype(compute_dtype)
    w1c = w1[2 * F_X:].astype(compute_dtype)
    w2_c = w2.astype(compute_dtype)
    b1_c = b1.astype(jnp.float32)
    b2_c = b2.astype(jnp.float32)

    # Edge tile: large for pipelining, shrunk for small E; pad E so every grid
    # block is full (padded rows are zeros and are sliced off below).
    tile_e = max(8, min(tile_e, _round_up(max(E, 1), 8)))
    e_pad = _round_up(max(E, 1), tile_e)
    if e_pad != E:
        pad = e_pad - E
        src_c = jnp.pad(src_c, ((0, pad), (0, 0)))
        dest_c = jnp.pad(dest_c, ((0, pad), (0, 0)))
        eattr_c = jnp.pad(eattr_c, ((0, pad), (0, 0)))

    grid = (e_pad // tile_e,)

    def edge_spec(feat):
        return pl.BlockSpec((tile_e, feat), lambda i: (i, 0))

    def resident_spec(r, c):
        return pl.BlockSpec((r, c), lambda i: (0, 0))

    itemsize = jnp.dtype(compute_dtype).itemsize
    cost = pl.CostEstimate(
        flops=2 * e_pad * (IN_DIM * HIDDEN + HIDDEN * OUT_DIM),
        transcendentals=0,
        bytes_accessed=(e_pad * (3 * F_X * itemsize + OUT_DIM * 4)
                        + (IN_DIM * HIDDEN + HIDDEN * OUT_DIM) * itemsize
                        + (HIDDEN + OUT_DIM) * 4),
    )

    out = pl.pallas_call(
        edge_mlp_kernel,
        out_shape=jax.ShapeDtypeStruct((e_pad, OUT_DIM), jnp.float32),
        grid=grid,
        in_specs=[
            edge_spec(F_X),                     # src tile
            edge_spec(F_X),                     # dest tile
            edge_spec(F_E),                     # edge_attr tile
            resident_spec(F_X, HIDDEN),         # W1[:32]
            resident_spec(F_X, HIDDEN),         # W1[32:64]
            resident_spec(F_E, HIDDEN),         # W1[64:96]
            resident_spec(1, HIDDEN),           # b1
            resident_spec(HIDDEN, OUT_DIM),     # W2
            resident_spec(1, OUT_DIM),          # b2
        ],
        out_specs=pl.BlockSpec((tile_e, OUT_DIM), lambda i: (i, 0)),
        compiler_params=pltpu.CompilerParams(
            dimension_semantics=("parallel",),   # shards edge tiles across TCs (v7x)
            vmem_limit_bytes=32 * 1024 * 1024,
        ),
        cost_estimate=cost,
    )(src_c, dest_c, eattr_c, w1a, w1b, w1c, b1_c, w2_c, b2_c)

    return out[:E]


def init_params(key):
    """Deterministic parameter init (shapes match nn.Linear(96,64), nn.Linear(64,64))."""
    k1, k2, k3, k4 = jax.random.split(key, 4)
    lim1 = 1.0 / jnp.sqrt(IN_DIM)
    lim2 = 1.0 / jnp.sqrt(HIDDEN)
    # Stored as (in, out) so the kernel does x @ W (== torch x @ W.T with W (out, in)).
    w1 = jax.random.uniform(k1, (IN_DIM, HIDDEN), jnp.float32, -lim1, lim1)
    b1 = jax.random.uniform(k2, (1, HIDDEN), jnp.float32, -lim1, lim1)
    w2 = jax.random.uniform(k3, (HIDDEN, OUT_DIM), jnp.float32, -lim2, lim2)
    b2 = jax.random.uniform(k4, (1, OUT_DIM), jnp.float32, -lim2, lim2)
    return w1, b1, w2, b2


def edge_model_ref(src, dest, edge_attr, params, compute_dtype=jnp.bfloat16):
    """Pure-JAX reference with the same bf16-operand / f32-accumulate numerics."""
    w1, b1, w2, b2 = params
    x = jnp.concatenate([src, dest, edge_attr], axis=1).astype(compute_dtype)
    h = jnp.dot(x, w1.astype(compute_dtype), preferred_element_type=jnp.float32) + b1
    h = jnp.maximum(h, 0.0)
    y = jnp.dot(h.astype(compute_dtype), w2.astype(compute_dtype),
                preferred_element_type=jnp.float32) + b2
    return y


if __name__ == "__main__":
    key = jax.random.PRNGKey(0)
    kp, ks, kd, ke = jax.random.split(key, 4)
    params = init_params(kp)

    # Small shapes consistent with the module (F_x = F_e = 32, out_dim = 64).
    E = 8
    src = jax.random.normal(ks, (E, F_X), jnp.float32)
    dest = jax.random.normal(kd, (E, F_X), jnp.float32)
    edge_attr = jax.random.normal(ke, (E, F_E), jnp.float32)
    u = None       # unused, matching the PyTorch forward
    batch = None   # unused, matching the PyTorch forward

    out = edge_model_forward(src, dest, edge_attr, u, batch, params)
    out = jax.block_until_ready(out)
    ref = edge_model_ref(src, dest, edge_attr, params)
    assert out.shape == (E, OUT_DIM), out.shape
    assert jnp.allclose(out, ref, atol=2e-3, rtol=2e-3), "mismatch vs reference (E=8)"

    # Exercise the multi-tile grid + padding path (E not a multiple of the tile).
    E2 = 50
    ks2, kd2, ke2 = jax.random.split(jax.random.PRNGKey(1), 3)
    src2 = jax.random.normal(ks2, (E2, F_X), jnp.float32)
    dest2 = jax.random.normal(kd2, (E2, F_X), jnp.float32)
    eattr2 = jax.random.normal(ke2, (E2, F_E), jnp.float32)
    out2 = edge_model_forward(src2, dest2, eattr2, None, None, params, tile_e=16)
    out2 = jax.block_until_ready(out2)
    ref2 = edge_model_ref(src2, dest2, eattr2, params)
    assert out2.shape == (E2, OUT_DIM), out2.shape
    assert jnp.allclose(out2, ref2, atol=2e-3, rtol=2e-3), "mismatch vs reference (E=50)"

    print("KERNEL_OK")
</pallas_src>

<mosaic_0001>
module attributes {stable_mosaic.version = 11 : i64} {
  func.func @edge_mlp_kernel(%arg0: i32, %arg1: memref<8x32xbf16, #tpu.memory_space<vmem>>, %arg2: memref<8x32xbf16, #tpu.memory_space<vmem>>, %arg3: memref<8x32xbf16, #tpu.memory_space<vmem>>, %arg4: memref<32x64xbf16, #tpu.memory_space<vmem>>, %arg5: memref<32x64xbf16, #tpu.memory_space<vmem>>, %arg6: memref<32x64xbf16, #tpu.memory_space<vmem>>, %arg7: memref<1x64xf32, #tpu.memory_space<vmem>>, %arg8: memref<64x64xbf16, #tpu.memory_space<vmem>>, %arg9: memref<1x64xf32, #tpu.memory_space<vmem>>, %arg10: memref<8x64xf32, #tpu.memory_space<vmem>>) attributes {dimension_semantics = [#tpu.dimension_semantics<parallel>], iteration_bounds = array<i64: 1>, scalar_prefetch = 0 : i64, scratch_operands = 0 : i64, tpu.core_type = #tpu.core_type<tc>, window_params = [{transform_indices = @transform_0, window_bounds = array<i64: 8, 32>}, {transform_indices = @transform_1, window_bounds = array<i64: 8, 32>}, {transform_indices = @transform_2, window_bounds = array<i64: 8, 32>}, {pipeline_mode = #tpu.pipeline_mode<synchronous>, transform_indices = @transform_3, window_bounds = array<i64: 32, 64>}, {pipeline_mode = #tpu.pipeline_mode<synchronous>, transform_indices = @transform_4, window_bounds = array<i64: 32, 64>}, {pipeline_mode = #tpu.pipeline_mode<synchronous>, transform_indices = @transform_5, window_bounds = array<i64: 32, 64>}, {pipeline_mode = #tpu.pipeline_mode<synchronous>, transform_indices = @transform_6, window_bounds = array<i64: 1, 64>}, {pipeline_mode = #tpu.pipeline_mode<synchronous>, transform_indices = @transform_7, window_bounds = array<i64: 64, 64>}, {pipeline_mode = #tpu.pipeline_mode<synchronous>, transform_indices = @transform_8, window_bounds = array<i64: 1, 64>}, {transform_indices = @transform_9, window_bounds = array<i64: 8, 64>}]} {
    %c0 = arith.constant 0 : index
    %c0_0 = arith.constant 0 : index
    %0 = vector.load %arg1[%c0, %c0_0] : memref<8x32xbf16, #tpu.memory_space<vmem>>, vector<8x32xbf16>
    %c0_1 = arith.constant 0 : index
    %c0_2 = arith.constant 0 : index
    %1 = vector.load %arg4[%c0_1, %c0_2] : memref<32x64xbf16, #tpu.memory_space<vmem>>, vector<32x64xbf16>
    %cst = arith.constant dense<0.000000e+00> : vector<8x64xf32>
    %2 = tpu.matmul %0, %1, %cst {dimension_numbers = #tpu.dot_dimension_numbers<[1], [0], [0], [1], [0, 0, 1, 1], [], []>} : vector<8x32xbf16>, vector<32x64xbf16>, vector<8x64xf32> -> vector<8x64xf32>
    %c0_3 = arith.constant 0 : index
    %c0_4 = arith.constant 0 : index
    %3 = vector.load %arg2[%c0_3, %c0_4] : memref<8x32xbf16, #tpu.memory_space<vmem>>, vector<8x32xbf16>
    %c0_5 = arith.constant 0 : index
    %c0_6 = arith.constant 0 : index
    %4 = vector.load %arg5[%c0_5, %c0_6] : memref<32x64xbf16, #tpu.memory_space<vmem>>, vector<32x64xbf16>
    %cst_7 = arith.constant dense<0.000000e+00> : vector<8x64xf32>
    %5 = tpu.matmul %3, %4, %cst_7 {dimension_numbers = #tpu.dot_dimension_numbers<[1], [0], [0], [1], [0, 0, 1, 1], [], []>} : vector<8x32xbf16>, vector<32x64xbf16>, vector<8x64xf32> -> vector<8x64xf32>
    %6 = arith.addf %2, %5 : vector<8x64xf32>
    %c0_8 = arith.constant 0 : index
    %c0_9 = arith.constant 0 : index
    %7 = vector.load %arg3[%c0_8, %c0_9] : memref<8x32xbf16, #tpu.memory_space<vmem>>, vector<8x32xbf16>
    %c0_10 = arith.constant 0 : index
    %c0_11 = arith.constant 0 : index
    %8 = vector.load %arg6[%c0_10, %c0_11] : memref<32x64xbf16, #tpu.memory_space<vmem>>, vector<32x64xbf16>
    %cst_12 = arith.constant dense<0.000000e+00> : vector<8x64xf32>
    %9 = tpu.matmul %7, %8, %cst_12 {dimension_numbers = #tpu.dot_dimension_numbers<[1], [0], [0], [1], [0, 0, 1, 1], [], []>} : vector<8x32xbf16>, vector<32x64xbf16>, vector<8x64xf32> -> vector<8x64xf32>
    %10 = arith.addf %6, %9 : vector<8x64xf32>
    %c0_13 = arith.constant 0 : index
    %c0_14 = arith.constant 0 : index
    %11 = vector.load %arg7[%c0_13, %c0_14] : memref<1x64xf32, #tpu.memory_space<vmem>>, vector<1x64xf32>
    %12 = vector.broadcast %11 : vector<1x64xf32> to vector<8x64xf32>
    %13 = arith.addf %10, %12 : vector<8x64xf32>
    %cst_15 = arith.constant 0.000000e+00 : f32
    %14 = vector.broadcast %cst_15 : f32 to vector<8x64xf32>
    %15 = arith.maximumf %13, %14 : vector<8x64xf32>
    %16 = arith.truncf %15 : vector<8x64xf32> to vector<8x64xbf16>
    %c0_16 = arith.constant 0 : index
    %c0_17 = arith.constant 0 : index
    %17 = vector.load %arg8[%c0_16, %c0_17] : memref<64x64xbf16, #tpu.memory_space<vmem>>, vector<64x64xbf16>
    %cst_18 = arith.constant dense<0.000000e+00> : vector<8x64xf32>
    %18 = tpu.matmul %16, %17, %cst_18 {dimension_numbers = #tpu.dot_dimension_numbers<[1], [0], [0], [1], [0, 0, 1, 1], [], []>} : vector<8x64xbf16>, vector<64x64xbf16>, vector<8x64xf32> -> vector<8x64xf32>
    %c0_19 = arith.constant 0 : index
    %c0_20 = arith.constant 0 : index
    %19 = vector.load %arg9[%c0_19, %c0_20] : memref<1x64xf32, #tpu.memory_space<vmem>>, vector<1x64xf32>
    %20 = vector.broadcast %19 : vector<1x64xf32> to vector<8x64xf32>
    %21 = arith.addf %18, %20 : vector<8x64xf32>
    %c0_21 = arith.constant 0 : index
    %c0_22 = arith.constant 0 : index
    %22 = vector.load %arg10[%c0_21, %c0_22] : memref<8x64xf32, #tpu.memory_space<vmem>>, vector<8x64xf32>
    tpu.vector_store %arg10[%c0_21, %c0_22], %21 {strides = array<i32>} : memref<8x64xf32, #tpu.memory_space<vmem>>, vector<8x64xf32>,
    return
  }
  func.func @transform_0(%arg0: i32) -> (i32, i32) {
    %c0_i32 = arith.constant 0 : i32
    %c0_i32_0 = arith.constant 0 : i32
    return %arg0, %c0_i32 : i32, i32
  }
  func.func @transform_1(%arg0: i32) -> (i32, i32) {
    %c0_i32 = arith.constant 0 : i32
    %c0_i32_0 = arith.constant 0 : i32
    return %arg0, %c0_i32 : i32, i32
  }
  func.func @transform_2(%arg0: i32) -> (i32, i32) {
    %c0_i32 = arith.constant 0 : i32
    %c0_i32_0 = arith.constant 0 : i32
    return %arg0, %c0_i32 : i32, i32
  }
  func.func @transform_3(%arg0: i32) -> (i32, i32) {
    %c0_i32 = arith.constant 0 : i32
    %c0_i32_0 = arith.constant 0 : i32
    %c0_i32_1 = arith.constant 0 : i32
    return %c0_i32, %c0_i32_0 : i32, i32
  }
  func.func @transform_4(%arg0: i32) -> (i32, i32) {
    %c0_i32 = arith.constant 0 : i32
    %c0_i32_0 = arith.constant 0 : i32
    %c0_i32_1 = arith.constant 0 : i32
    return %c0_i32, %c0_i32_0 : i32, i32
  }
  func.func @transform_5(%arg0: i32) -> (i32, i32) {
    %c0_i32 = arith.constant 0 : i32
    %c0_i32_0 = arith.constant 0 : i32
    %c0_i32_1 = arith.constant 0 : i32
    return %c0_i32, %c0_i32_0 : i32, i32
  }
  func.func @transform_6(%arg0: i32) -> (i32, i32) {
    %c0_i32 = arith.constant 0 : i32
    %c0_i32_0 = arith.constant 0 : i32
    %c0_i32_1 = arith.constant 0 : i32
    return %c0_i32, %c0_i32_0 : i32, i32
  }
  func.func @transform_7(%arg0: i32) -> (i32, i32) {
    %c0_i32 = arith.constant 0 : i32
    %c0_i32_0 = arith.constant 0 : i32
    %c0_i32_1 = arith.constant 0 : i32
    return %c0_i32, %c0_i32_0 : i32, i32
  }
  func.func @transform_8(%arg0: i32) -> (i32, i32) {
    %c0_i32 = arith.constant 0 : i32
    %c0_i32_0 = arith.constant 0 : i32
    %c0_i32_1 = arith.constant 0 : i32
    return %c0_i32, %c0_i32_0 : i32, i32
  }
  func.func @transform_9(%arg0: i32) -> (i32, i32) {
    %c0_i32 = arith.constant 0 : i32
    %c0_i32_0 = arith.constant 0 : i32
    return %arg0, %c0_i32 : i32, i32
  }
}

</mosaic_0001>

<bundles_post_ra>
// kernel: tpu_custom_call.1
= control target key start
LH: loop header
LB: loop body
LE: loop exit
PB: predicated region body
PF: predicated region fallthrough
CT: control target
= control target key end

     0   :  { %14 = vsyncpa [#allocation3], 0  ;;  %s689_s0 = inlined_call_operand.hbm [shape: bf16[8,32], index: 0, kind: input, shape index: {}]   ;;  %s690_s1 = inlined_call_operand.hbm [shape: bf16[8,32], index: 1, kind: input, shape index: {}]   ;;  %s691_s2 = inlined_call_operand.hbm [shape: bf16[8,32], index: 2, kind: input, shape index: {}]   ;;  %s692_s3 = inlined_call_operand.hbm [shape: bf16[32,64], index: 3, kind: input, shape index: {}]   ;;  %s693_s4 = inlined_call_operand.hbm [shape: bf16[32,64], index: 4, kind: input, shape index: {}]   ;;  %s694_s5 = inlined_call_operand.hbm [shape: bf16[32,64], index: 5, kind: input, shape index: {}]   ;;  %s695_s6 = inlined_call_operand.vmem [shape: f32[1,64], index: 6, kind: input, shape index: {}]   ;;  %s696_s7 = inlined_call_operand.hbm [shape: bf16[64,64], index: 7, kind: input, shape index: {}]   ;;  %s697_s8 = inlined_call_operand.vmem [shape: f32[1,64], index: 8, kind: input, shape index: {}]   ;;  %s698_s9 = inlined_call_operand.hbm [shape: f32[8,64], index: 9, kind: output, shape index: {}]  }
   0x1   :  { %15 = vsyncpa [#allocation6], 0 }
   0x2   :  { %16 = vsyncpa [#allocation9], 0 }
   0x3   :  { %17 = vsyncpa [#allocation12], 0  ;;  %s35_s11 = sshll.u32 %s690_s1, 4  ;;  %s36_s11 = int_to_ptr.hbm [resolvable:$true] %s35_s11 }
   0x4   :  { %18 = vsyncpa [#allocation4], 0  ;;  %s587_s12 = smov [#allocation5]   ;;  %s56_s16 = sshll.u32 %s692_s3, 4  ;;  %s57_s16 = int_to_ptr.hbm [resolvable:$true] %s56_s16 }
   0x5   :  { %s37_s13 = sshll.u32 %s587_s12, 4  ;;  %s588_s17 = smov [#allocation8]   ;;  %s38_s13 = int_to_ptr.vmem [resolvable:$true] %s37_s13 }
   0x6   :  { %40 = dma.hbm_to_vmem [thread:$0]  %s36_s11, 64, %s38_s13, [#allocation6]  }
   0x7   :  { %s58_s18 = sshll.u32 %s588_s17, 4  ;;  %s589_s19 = smov 64   ;;  %s59_s18 = int_to_ptr.vmem [resolvable:$true] %s58_s18 }
   0x8   :  { %s590_s20 = smov 4   ;;  %s82_s22 = sshll.u32 %s694_s5, 4  ;;  %s83_s22 = int_to_ptr.hbm [resolvable:$true] %s82_s22 }
   0x9   :  { %64 = dma.hbm_to_vmem [thread:$0]  %s57_s16, 256, %s59_s18, [#allocation9], %s589_s19, %s589_s19, %s590_s20  }
   0xa   :  { %s591_s23 = smov [#allocation11]   ;;  %s24_s26 = sshll.u32 %s689_s0, 4  ;;  %s25_s26 = int_to_ptr.hbm [resolvable:$true] %s24_s26 }
   0xb   :  { %s84_s24 = sshll.u32 %s591_s23, 4  ;;  %s592_s27 = smov [#allocation2]   ;;  %s85_s24 = int_to_ptr.vmem [resolvable:$true] %s84_s24 }
   0xc   :  { %90 = dma.hbm_to_vmem [thread:$0]  %s83_s22, 256, %s85_s24, [#allocation12], %s589_s19, %s589_s19, %s590_s20  }
   0xd   :  { %s26_s28 = sshll.u32 %s592_s27, 4  ;;  %s46_s10 = sshll.u32 %s691_s2, 4  ;;  %s27_s28 = int_to_ptr.vmem [resolvable:$true] %s26_s28  ;;  %s47_s10 = int_to_ptr.hbm [resolvable:$true] %s46_s10 }
   0xe   :  { %29 = dma.hbm_to_vmem [thread:$0]  %s25_s26, 64, %s27_s28, [#allocation3]  }
   0xf   :  { %s69_s12 = sshll.u32 %s693_s4, 4  ;;  %s593_s13 = smov [#allocation7]   ;;  %s70_s12 = int_to_ptr.hbm [resolvable:$true] %s69_s12 }
  0x10   :  { %s48_s0 = sshll.u32 %s593_s13, 4  ;;  %s594_s14 = smov [#allocation10]   ;;  %s49_s0 = int_to_ptr.vmem [resolvable:$true] %s48_s0 }
  0x11   :  { %51 = dma.hbm_to_vmem [thread:$0]  %s47_s10, 64, %s49_s0, [#allocation6]  }
  0x12   :  { %s71_s15 = sshll.u32 %s594_s14, 4  ;;  %s97_s18 = sshll.u32 %s696_s7, 4  ;;  %s72_s15 = int_to_ptr.vmem [resolvable:$true] %s71_s15  ;;  %s98_s18 = int_to_ptr.hbm [resolvable:$true] %s97_s18 }
  0x13   :  { %77 = dma.hbm_to_vmem [thread:$0]  %s70_s12, 256, %s72_s15, [#allocation9], %s589_s19, %s589_s19, %s590_s20  }
  0x14   :  { %s595_s2 = smov [#allocation13]  }
  0x15   :  { %s99_s1 = sshll.u32 %s595_s2, 4  ;;  %s100_s1 = int_to_ptr.vmem [resolvable:$true] %s99_s1 }
  0x16   :  { %105 = dma.hbm_to_vmem [thread:$0]  %s98_s18, 512, %s100_s1, [#allocation12], %s589_s19, %s589_s19, %s590_s20  }
  0x17   :  { %577 = dma.done.wait [#allocation3], 64  }
  0x18   :  { %578 = vsyncadd [#allocation3], 4294967232 }
  0x19   :  { %579 = dma.done.wait [#allocation6], 128  }
  0x1a   :  { %580 = vsyncadd [#allocation6], 4294967168 }
  0x1b   :  { %581 = dma.done.wait [#allocation9], 512  }
  0x1c   :  { %582 = vsyncadd [#allocation9], 4294966784 }
  0x1d   :  { %583 = dma.done.wait [#allocation12], 768  }
  0x1e   :  { %584 = vsyncadd [#allocation12], 4294966528  ;;  %v366_v0 = vld [vmem:[#allocation10 + $0x8] sm:$0xff]  ;;  %v364_v1 = vld [vmem:[#allocation8 + $0x8] sm:$0xff]  ;;  %vm159_vm0 = vcmask 261120   ;;  %vm281_vm1 = vcmask 523264  }
  0x1f   :  { %v368_v2 = vld [vmem:[#allocation11 + $0x8] sm:$0xff]  ;;  %169 = vmatpush.bf16.msra.mxu0 %v366_v0  ;;  %197 = vmatpush.bf16.msra.mxu1 %v364_v1  ;;  %v365_v3 = vld [vmem:[#allocation10] sm:$0xff]  ;;  %v363_v4 = vld [vmem:[#allocation8] sm:$0xff]  ;;  %s596_s21 = smov [#allocation14]  }
  0x20   :  { %230 = vmatpush.bf16.msra.mxu2 %v368_v2  ;;  %v367_v5 = vld [vmem:[#allocation11] sm:$0xff]  ;;  %v142_v6 = vld [vmem:[#allocation5] sm:$0xf]  ;;  %v137_v7 = vld [vmem:[#allocation2] sm:$0xf]  ;;  %s304_s22 = sshll.u32 %s596_s21, 4  ;;  %s305_s22 = int_to_ptr.vmem [resolvable:$true] %s304_s22 }
  0x21   :  { %v204_v8 = vld [vmem:[#allocation7] sm:$0xf]  ;;  %v372_v9 = vld [vmem:[#allocation13 + $0x18] sm:$0xff]  ;;  %v371_v10 = vld [vmem:[#allocation13 + $0x10] sm:$0xff] }
  0x22   :  { %289 = vmatpush.bf16.msra.mxu3 %v372_v9  ;;  %v370_v11 = vld [vmem:[#allocation13 + $0x8] sm:$0xff]  ;;  %v369_v12 = vld [vmem:[#allocation13] sm:$0xff] }
  0x23   :  { %170 = vmatpush.bf16.msra.mxu0 %v365_v3  ;;  %198 = vmatpush.bf16.msra.mxu1 %v363_v4  ;;  %v383_v16 = vld [vmem:[%s695_s6] ss:$0 sm:$0xff]  ;;  %s306_s6 = sshll.u32 %s698_s9, 4  ;;  %s307_s6 = int_to_ptr.hbm [resolvable:$true] %s306_s6 }
  0x24   :  { %231 = vmatpush.bf16.msra.mxu2 %v367_v5  ;;  %v384_v25 = vld [vmem:[%s697_s8] ss:$0 sm:$0xff] }
  0x26   :  { %327 = vmatmul.msk.bf16.vlgmr.msra.gmra.mxu0 %vm159_vm0, %v142_v6  ;;  %336 = vmatmul.msk.bf16.vlgmr.msra.gmra.mxu1 %vm159_vm0, %v137_v7 }
  0x27   :  { %345 = vmatmul.msk.bf16.vlgmr.msra.gmra.mxu2 %vm159_vm0, %v204_v8  ;;  %290 = vmatpush.bf16.msra.mxu3 %v371_v10 }
  0x2b   :  { %291 = vmatpush.bf16.msra.mxu3 %v370_v11 }
  0x2f   :  { %292 = vmatpush.bf16.msra.mxu3 %v369_v12 }
  0xa3   :  { %v172_v13 = vpop.f32.mrf.mxu0  ;;  %v200_v14 = vpop.f32.mrf.mxu1 }
  0xa4   :  { %v201_v15 = vadd.f32 %v200_v14, %v172_v13 }
  0xaa   :  { %v233_v17 = vpop.f32.mrf.mxu2 }
  0xab   :  { %v237_v18 = vadd.f32 %v233_v17, %v201_v15  ;;  %v174_v19 = vpop.f32.mrf.mxu0  ;;  %v202_v20 = vpop.f32.mrf.mxu1 }
  0xad   :  { %v242_v21 = vadd.f32 %v383_v16, %v237_v18 }
  0xaf   :  { %v243_v22 = vmax.f32 %v242_v21, 0.0 }
  0xb1   :  { %v244_v23 = vpack.c.bf16 %v243_v22, %v243_v22 }
  0xb2   :  { %v235_v24 = vpop.f32.mrf.mxu2 }
  0xb3   :  { %362 = vmatmul.msk.bf16.vlgmr.msra.gmra.mxu3 %vm281_vm1, %v244_v23 }
 0x136   :  { %v294_v26 = vpop.f32.mrf.mxu3 }
 0x137   :  { %v295_v27 = vadd.f32 %v384_v25, %v294_v26 }
 0x139   :  { %298 = vst.msk [vmem:[#allocation14] sm:$0xff] %vm281_vm1, %v295_v27 }
 0x13a   :  { %309 = dma.vmem_to_hbm [thread:$0]  %s305_s22, 128, %s307_s6, [#allocation4]  }
 0x13e   :  { %v296_v28 = vpop.f32.mrf.mxu3 }
 0x13f   :  { %585 = dma.done.wait [#allocation4], 128  }
 0x140   :  { %586 = vsyncadd [#allocation4], 4294967168 }
 0x141   :  { %314 = vsyncpa [#allocation3], 1 }
 0x142   :  { %315 = vsyncpa [#allocation6], 1 }
 0x143   :  { %316 = vsyncpa [#allocation9], 1 }
 0x144   :  { %317 = vsyncpa [#allocation12], 1 }
 0x145   :  { %318 = vsyncpa [#allocation4], 1 }

</bundles_post_ra>
